<compile_context>
chip_gen: v7x
topology: tpu7x:2x2x1
jax: 0.10.0
libtpu: 0.0.40
codegen_flags: <defaults>
</compile_context>

<pallas_src>
import functools

import jax
import jax.numpy as jnp
from jax.experimental import pallas as pl
from jax.experimental.pallas import tpu as pltpu

_LANE = 128
_NEG_BIG = -1e30  # effectively -inf for softmax, avoids inf-inf NaNs


def mlp_kernel(x_ref, w1_ref, b1_ref, w2_ref, b2_ref, o_ref):
    # x_ref:  (TM, nfeat)       bf16 tile of the (padded) batch
    # w1_ref: (nfeat, nhid)     bf16, pre-transposed fc1 weight, VMEM-resident
    # b1_ref: (1, nhid)         f32
    # w2_ref: (nhid, nclass_p)  bf16, pre-transposed, class dim padded to 128x
    # b2_ref: (1, nclass_p)     f32, padded columns hold -1e30
    # o_ref:  (TM, nclass_p)    f32 lane-dense output slab
    x = x_ref[...]

    # fc1 + ReLU: bf16 operands on the MXU, f32 accumulation, f32 epilogue.
    h = jnp.dot(x, w1_ref[...], preferred_element_type=jnp.float32)
    h = jnp.maximum(h + b1_ref[...], 0.0)

    # fc2: padded classes get z = 0*h + (-1e30) -> exp underflows to exact 0.
    z = jnp.dot(h.astype(jnp.bfloat16), w2_ref[...],
                preferred_element_type=jnp.float32) + b2_ref[...]

    # Numerically stable log_softmax over the class (last) dim.
    m = jnp.max(z, axis=-1, keepdims=True)
    s = jnp.sum(jnp.exp(z - m), axis=-1, keepdims=True)
    o_ref[...] = (z - m - jnp.log(s)).astype(o_ref.dtype)


def _round_up(v, m):
    return ((v + m - 1) // m) * m


def _choose_tm(n):
    """Row-tile size: one full tile for small batches, else MXU-aligned 512."""
    n8 = _round_up(n, 8)
    if n8 <= 512:
        return n8          # single tile; weights resident anyway
    return 512             # multiple of 128/256, VMEM-safe with resident weights


def prepare_params(w1, b1, w2, b2):
    """One-time weight prep (hoisted out of the forward): transpose, pad, cast."""
    nhid, nfeat = w1.shape
    nclass = w2.shape[0]
    nclass_p = _round_up(nclass, _LANE)

    w1_t = jnp.asarray(w1, jnp.float32).T.astype(jnp.bfloat16)          # (nfeat, nhid)
    b1_2d = jnp.asarray(b1, jnp.float32).reshape(1, nhid)

    w2_t = jnp.zeros((nhid, nclass_p), jnp.bfloat16)
    w2_t = w2_t.at[:, :nclass].set(
        jnp.asarray(w2, jnp.float32).T.astype(jnp.bfloat16))            # (nhid, nclass_p)
    b2_p = jnp.full((1, nclass_p), _NEG_BIG, jnp.float32)
    b2_p = b2_p.at[0, :nclass].set(jnp.asarray(b2, jnp.float32))

    return w1_t, b1_2d, w2_t, b2_p, nclass


@functools.partial(jax.jit, static_argnames=("nclass",))
def mlp_forward(x, w1_t, b1_2d, w2_t, b2_p, *, nclass):
    n, nfeat = x.shape
    nhid = w1_t.shape[1]
    nclass_p = w2_t.shape[1]

    tm = _choose_tm(n)
    n_p = _round_up(n, tm)

    # bf16 x for the MXU; zero-pad the batch so no grid tile holds garbage rows.
    x_bf = x.astype(jnp.bfloat16)
    if n_p != n:
        x_bf = jnp.zeros((n_p, nfeat), jnp.bfloat16).at[:n].set(x_bf)

    grid = (n_p // tm,)

    # Explicit VMEM budget: resident weights (x1, Buffered(1)) + double-buffered
    # x / out tiles + f32 intermediates, with headroom. Capped for v7x (64 MiB).
    resident = (nfeat * nhid + nhid * nclass_p) * 2 + (nhid + nclass_p) * 4
    tiles = 2 * tm * nfeat * 2 + 2 * tm * nclass_p * 4
    work = 2 * tm * (nhid + nclass_p) * 4
    vmem_limit = int(min(64 * 2 ** 20,
                         max(32 * 2 ** 20, int(1.5 * (resident + tiles + work)))))

    cost = pl.CostEstimate(
        flops=2 * n_p * (nfeat * nhid + nhid * nclass_p),
        transcendentals=n_p * (nclass_p + 1),          # exp per class + log per row
        bytes_accessed=(2 * n_p * nfeat                # bf16 x
                        + 2 * (nfeat * nhid + nhid * nclass_p)   # bf16 weights
                        + 4 * (nhid + nclass_p)        # f32 biases
                        + 4 * n_p * nclass_p),         # f32 output
    )

    out_p = pl.pallas_call(
        mlp_kernel,
        out_shape=jax.ShapeDtypeStruct((n_p, nclass_p), jnp.float32),
        grid_spec=pltpu.PrefetchScalarGridSpec(
            num_scalar_prefetch=0,
            grid=grid,
            in_specs=[
                pl.BlockSpec((tm, nfeat), lambda i: (i, 0)),        # x tile
                pl.BlockSpec((nfeat, nhid), lambda i: (0, 0),
                             pipeline_mode=pl.Buffered(1)),         # w1^T resident
                pl.BlockSpec((1, nhid), lambda i: (0, 0),
                             pipeline_mode=pl.Buffered(1)),         # b1
                pl.BlockSpec((nhid, nclass_p), lambda i: (0, 0),
                             pipeline_mode=pl.Buffered(1)),         # w2^T padded
                pl.BlockSpec((1, nclass_p), lambda i: (0, 0),
                             pipeline_mode=pl.Buffered(1)),         # b2 padded
            ],
            out_specs=pl.BlockSpec((tm, nclass_p), lambda i: (i, 0)),
        ),
        compiler_params=pltpu.CompilerParams(
            dimension_semantics=("parallel",),
            vmem_limit_bytes=vmem_limit,
        ),
        cost_estimate=cost,
    )(x_bf, w1_t, b1_2d, w2_t, b2_p)

    # slice off the batch padding and the lane padding
    return out_p[:n, :nclass]


def mlp_apply(x, w1, b1, w2, b2):
    """Convenience: prep + forward (prep should be cached for repeated calls)."""
    w1_t, b1_2d, w2_t, b2_p, nclass = prepare_params(w1, b1, w2, b2)
    return mlp_forward(x, w1_t, b1_2d, w2_t, b2_p, nclass=nclass)


def mlp_reference(x, w1, b1, w2, b2):
    h = jnp.maximum(x @ w1.T + b1, 0.0)
    z = h @ w2.T + b2
    return jax.nn.log_softmax(z, axis=1)


if __name__ == "__main__":
    # Small shapes consistent with the module: batch=8, nfeat=32, nhid=32, nclass=16
    batch, nfeat, nhid, nclass = 8, 32, 32, 16

    key = jax.random.PRNGKey(0)
    kx, k1, k2, k3, k4 = jax.random.split(key, 5)

    x = jax.random.normal(kx, (batch, nfeat), dtype=jnp.float32)

    # PyTorch Linear shapes: W = (out, in), b = (out,)
    w1 = jax.random.normal(k1, (nhid, nfeat), dtype=jnp.float32) * (1.0 / jnp.sqrt(nfeat))
    b1 = jax.random.normal(k2, (nhid,), dtype=jnp.float32) * 0.01
    w2 = jax.random.normal(k3, (nclass, nhid), dtype=jnp.float32) * (1.0 / jnp.sqrt(nhid))
    b2 = jax.random.normal(k4, (nclass,), dtype=jnp.float32) * 0.01

    out = mlp_apply(x, w1, b1, w2, b2)
    out = jax.block_until_ready(out)

    ref = mlp_reference(x, w1, b1, w2, b2)
    assert out.shape == (batch, nclass)
    # bf16 MXU operands (f32 accumulation) -> tolerance loosened from 1e-5.
    assert jnp.allclose(out, ref, atol=5e-2, rtol=5e-2), "mismatch vs reference"

    print("KERNEL_OK")
</pallas_src>

<mosaic_0001>
module attributes {stable_mosaic.version = 11 : i64} {
  func.func @mlp_kernel(%arg0: i32, %arg1: memref<8x32xbf16, #tpu.memory_space<vmem>>, %arg2: memref<32x32xbf16, #tpu.memory_space<vmem>>, %arg3: memref<1x32xf32, #tpu.memory_space<vmem>>, %arg4: memref<32x128xbf16, #tpu.memory_space<vmem>>, %arg5: memref<1x128xf32, #tpu.memory_space<vmem>>, %arg6: memref<8x128xf32, #tpu.memory_space<vmem>>) attributes {dimension_semantics = [#tpu.dimension_semantics<parallel>], iteration_bounds = array<i64: 1>, scalar_prefetch = 0 : i64, scratch_operands = 0 : i64, tpu.core_type = #tpu.core_type<tc>, window_params = [{transform_indices = @transform_0, window_bounds = array<i64: 8, 32>}, {pipeline_mode = #tpu.pipeline_mode<synchronous>, transform_indices = @transform_1, window_bounds = array<i64: 32, 32>}, {pipeline_mode = #tpu.pipeline_mode<synchronous>, transform_indices = @transform_2, window_bounds = array<i64: 1, 32>}, {pipeline_mode = #tpu.pipeline_mode<synchronous>, transform_indices = @transform_3, window_bounds = array<i64: 32, 128>}, {pipeline_mode = #tpu.pipeline_mode<synchronous>, transform_indices = @transform_4, window_bounds = array<i64: 1, 128>}, {transform_indices = @transform_5, window_bounds = array<i64: 8, 128>}]} {
    %c0 = arith.constant 0 : index
    %c0_0 = arith.constant 0 : index
    %0 = vector.load %arg1[%c0, %c0_0] : memref<8x32xbf16, #tpu.memory_space<vmem>>, vector<8x32xbf16>
    %c0_1 = arith.constant 0 : index
    %c0_2 = arith.constant 0 : index
    %1 = vector.load %arg2[%c0_1, %c0_2] : memref<32x32xbf16, #tpu.memory_space<vmem>>, vector<32x32xbf16>
    %cst = arith.constant dense<0.000000e+00> : vector<8x32xf32>
    %2 = tpu.matmul %0, %1, %cst {dimension_numbers = #tpu.dot_dimension_numbers<[1], [0], [0], [1], [0, 0, 1, 1], [], []>} : vector<8x32xbf16>, vector<32x32xbf16>, vector<8x32xf32> -> vector<8x32xf32>
    %c0_3 = arith.constant 0 : index
    %c0_4 = arith.constant 0 : index
    %3 = vector.load %arg3[%c0_3, %c0_4] : memref<1x32xf32, #tpu.memory_space<vmem>>, vector<1x32xf32>
    %4 = vector.broadcast %3 : vector<1x32xf32> to vector<8x32xf32>
    %5 = arith.addf %2, %4 : vector<8x32xf32>
    %cst_5 = arith.constant 0.000000e+00 : f32
    %6 = vector.broadcast %cst_5 : f32 to vector<8x32xf32>
    %7 = arith.maximumf %5, %6 : vector<8x32xf32>
    %8 = arith.truncf %7 : vector<8x32xf32> to vector<8x32xbf16>
    %c0_6 = arith.constant 0 : index
    %c0_7 = arith.constant 0 : index
    %9 = vector.load %arg4[%c0_6, %c0_7] : memref<32x128xbf16, #tpu.memory_space<vmem>>, vector<32x128xbf16>
    %cst_8 = arith.constant dense<0.000000e+00> : vector<8x128xf32>
    %10 = tpu.matmul %8, %9, %cst_8 {dimension_numbers = #tpu.dot_dimension_numbers<[1], [0], [0], [1], [0, 0, 1, 1], [], []>} : vector<8x32xbf16>, vector<32x128xbf16>, vector<8x128xf32> -> vector<8x128xf32>
    %c0_9 = arith.constant 0 : index
    %c0_10 = arith.constant 0 : index
    %11 = vector.load %arg5[%c0_9, %c0_10] : memref<1x128xf32, #tpu.memory_space<vmem>>, vector<1x128xf32>
    %12 = vector.broadcast %11 : vector<1x128xf32> to vector<8x128xf32>
    %13 = arith.addf %10, %12 : vector<8x128xf32>
    %cst_11 = arith.constant dense<0xFF800000> : vector<8xf32>
    %14 = vector.multi_reduction <maximumf>, %13, %cst_11 [1] : vector<8x128xf32> to vector<8xf32>
    %15 = vector.shape_cast %14 : vector<8xf32> to vector<8x1xf32>
    %16 = vector.broadcast %15 : vector<8x1xf32> to vector<8x128xf32>
    %17 = arith.subf %13, %16 : vector<8x128xf32>
    %18 = math.exp %17 : vector<8x128xf32>
    %cst_12 = arith.constant dense<0.000000e+00> : vector<8xf32>
    %19 = vector.multi_reduction <add>, %18, %cst_12 [1] : vector<8x128xf32> to vector<8xf32>
    %20 = vector.shape_cast %19 : vector<8xf32> to vector<8x1xf32>
    %21 = vector.broadcast %15 : vector<8x1xf32> to vector<8x128xf32>
    %22 = arith.subf %13, %21 : vector<8x128xf32>
    %23 = math.log %20 : vector<8x1xf32>
    %24 = vector.broadcast %23 : vector<8x1xf32> to vector<8x128xf32>
    %25 = arith.subf %22, %24 : vector<8x128xf32>
    %c0_13 = arith.constant 0 : index
    %c0_14 = arith.constant 0 : index
    %26 = vector.load %arg6[%c0_13, %c0_14] : memref<8x128xf32, #tpu.memory_space<vmem>>, vector<8x128xf32>
    tpu.vector_store %arg6[%c0_13, %c0_14], %25 {strides = array<i32>} : memref<8x128xf32, #tpu.memory_space<vmem>>, vector<8x128xf32>,
    return
  }
  func.func @transform_0(%arg0: i32) -> (i32, i32) {
    %c0_i32 = arith.constant 0 : i32
    %c0_i32_0 = arith.constant 0 : i32
    return %arg0, %c0_i32 : i32, i32
  }
  func.func @transform_1(%arg0: i32) -> (i32, i32) {
    %c0_i32 = arith.constant 0 : i32
    %c0_i32_0 = arith.constant 0 : i32
    %c0_i32_1 = arith.constant 0 : i32
    return %c0_i32, %c0_i32_0 : i32, i32
  }
  func.func @transform_2(%arg0: i32) -> (i32, i32) {
    %c0_i32 = arith.constant 0 : i32
    %c0_i32_0 = arith.constant 0 : i32
    %c0_i32_1 = arith.constant 0 : i32
    return %c0_i32, %c0_i32_0 : i32, i32
  }
  func.func @transform_3(%arg0: i32) -> (i32, i32) {
    %c0_i32 = arith.constant 0 : i32
    %c0_i32_0 = arith.constant 0 : i32
    %c0_i32_1 = arith.constant 0 : i32
    return %c0_i32, %c0_i32_0 : i32, i32
  }
  func.func @transform_4(%arg0: i32) -> (i32, i32) {
    %c0_i32 = arith.constant 0 : i32
    %c0_i32_0 = arith.constant 0 : i32
    %c0_i32_1 = arith.constant 0 : i32
    return %c0_i32, %c0_i32_0 : i32, i32
  }
  func.func @transform_5(%arg0: i32) -> (i32, i32) {
    %c0_i32 = arith.constant 0 : i32
    %c0_i32_0 = arith.constant 0 : i32
    return %arg0, %c0_i32 : i32, i32
  }
}

</mosaic_0001>

<bundles_post_ra>
// kernel: mlp_forward.1
= control target key start
LH: loop header
LB: loop body
LE: loop exit
PB: predicated region body
PF: predicated region fallthrough
CT: control target
= control target key end

     0   :  { %10 = vsyncpa [#allocation3], 0  ;;  %s365_s0 = inlined_call_operand.vmem [shape: bf16[8,32], index: 0, kind: input, shape index: {}]   ;;  %s366_s1 = inlined_call_operand.hbm [shape: bf16[32,32], index: 1, kind: input, shape index: {}]   ;;  %s367_s2 = inlined_call_operand.vmem [shape: f32[1,32], index: 2, kind: input, shape index: {}]   ;;  %s368_s3 = inlined_call_operand.vmem [shape: bf16[32,128], index: 3, kind: input, shape index: {}]   ;;  %s369_s4 = inlined_call_operand.vmem [shape: f32[1,128], index: 4, kind: input, shape index: {}]   ;;  %s370_s5 = inlined_call_operand.hbm [shape: f32[8,128], index: 5, kind: output, shape index: {}]  }
   0x1   :  { %11 = vsyncpa [#allocation4], 0  ;;  %s290_s18 = smov [#allocation2]   ;;  %s242_s22 = scalar_lea.hbm %s366_s1, 256 }
   0x2   :  { %s19_s19 = sshll.u32 %s290_s18, 4  ;;  %p243_p0 = scmp.ne.s32.totalorder %s366_s1, %s242_s22  ;;  %s20_s19 = int_to_ptr.vmem [resolvable:$true] %s19_s19 }
   0x3   :  { %p246_p1 = scmp.lt.u32.totalorder %s242_s22, %s366_s1 }
   0x5   :  { %p248_p2 = pnand %p246_p1, %p243_p0 }
   0x7   :  { %251 = shalt.err (!%p248_p2)
}
   0x8   :  { %s252_s27 = scalar_lea.vmem %s20_s19, 256  ;;  %p257_p4 = scmp.lt.s32.totalorder %s20_s19, %s20_s19 }
   0x9   :  { %p253_p3 = scmp.ne.s32.totalorder %s20_s19, %s252_s27  ;;  %p258_p5 = scmp.lt.s32.totalorder %s252_s27, %s252_s27 }
   0xb   :  { %p259_p6 = por %p258_p5, %p257_p4 }
   0xd   :  { %p260_p7 = pnand %p259_p6, %p253_p3 }
   0xf   :  { %263 = shalt.err (!%p260_p7)
}
  0x10   :  { %s291_s28 = smov 64   ;;  %s292_s29 = smov 4  }
  0x11   :  { %25 = dma.hbm_to_vmem [thread:$0]  %s366_s1, 256, %s20_s19, [#allocation3], %s291_s28, %s291_s28, %s292_s29  }
  0x12   :  { %286 = dma.done.wait [#allocation3], 256  }
  0x13   :  { %287 = vsyncadd [#allocation3], 4294967040  ;;  %v293_v0 = vmov 0.0   ;;  %vm294_vm0 = vmmov 0   ;;  %v234_v1 = vld [vmem:[#allocation2] sm:$0xff]   ;;  %v235_v2 = vld [vmem:[#allocation2 + $0x8] sm:$0xff]  }
  0x14   :  { %212 = vmatprep.subr.bf16.mxu0 %v293_v0  ;;  %216 = vmatprep.mubr.msk.bf16.mxu0 %vm294_vm0, %v293_v0  ;;  %v36_v3 = vld [vmem:[%s365_s0] sm:$0xf]  ;;  %vm60_vm1 = vcmask 261120   ;;  %v237_v5 = vld [vmem:[%s368_s3 + $0x8] sm:$0xff]  }
  0x15   :  { %220 = vmatprep.subr.bf16.mxu1 %v293_v0  ;;  %224 = vmatprep.mubr.msk.bf16.mxu1 %vm294_vm0, %v293_v0  ;;  %v236_v4 = vld [vmem:[%s368_s3] sm:$0xff]  }
  0x16   :  { %213 = vmatpush3.bf16.msra.mxu0 %v234_v1  ;;  %221 = vmatpush3.bf16.msra.mxu1 %v236_v4  ;;  %v198_v6 = vld [vmem:[%s367_s2] ss:$0 sm:$0xff]  ;;  %s295_s2 = smov [#allocation5]  }
  0x17   :  { %214 = vmatprep.subr.bf16.mxu0 %v293_v0  ;;  %222 = vmatprep.subr.bf16.mxu1 %v293_v0  ;;  %v202_v14 = vld [vmem:[%s369_s4] ss:$0 sm:$0xff]  ;;  %s189_s3 = sshll.u32 %s295_s2, 4  ;;  %s190_s3 = int_to_ptr.vmem [resolvable:$true] %s189_s3 }
  0x18   :  { %s264_s4 = scalar_lea.vmem %s190_s3, 128  ;;  %p269_p9 = scmp.lt.s32.totalorder %s190_s3, %s190_s3 }
  0x19   :  { %p265_p8 = scmp.ne.s32.totalorder %s190_s3, %s264_s4  ;;  %p270_p10 = scmp.lt.s32.totalorder %s264_s4, %s264_s4 }
  0x1a   :  { %215 = vmatpush3.bf16.msra.mxu0 %v235_v2  ;;  %223 = vmatpush3.bf16.msra.mxu1 %v237_v5 }
  0x1b   :  { %p271_p11 = por %p270_p10, %p269_p9 }
  0x1d   :  { %217 = vmatmul.mubr.msk.bf16.vlgmr.msra.gmra.mrb[0].mxu0 %vm60_vm1, %v36_v3  ;;  %p272_p12 = pnand %p271_p11, %p265_p8 }
  0xf0   :  { %v98_v7 = vpop.f32.mrb[0].mxu0 }
  0xf1   :  { %v99_v8 = vadd.f32 %v198_v6, %v98_v7  ;;  %v218_v9 = vpop.f32.mrb[1].mxu0 }
  0xf2   :  { %v101_v10 = vpop.f32.mrb[2].mxu0 }
  0xf3   :  { %v104_v11 = vmax.f32 %v99_v8, 0.0  ;;  %v219_v12 = vpop.f32.mrb[3].mxu0 }
  0xf5   :  { %v105_v13 = vpack.c.bf16 %v104_v11, %v104_v11 }
  0xf7   :  { %225 = vmatmul.mubr.msk.bf16.vlgmr.msra.gmra.mrb[0].mxu1 %vm60_vm1, %v105_v13 }
 0x1ca   :  { %v166_v15 = vpop.f32.mrb[0].mxu1 }
 0x1cb   :  { %v167_v16 = vadd.f32 %v202_v14, %v166_v15  ;;  %v226_v17 = vpop.f32.mrb[1].mxu1 }
 0x1cc   :  { %v169_v18 = vpop.f32.mrb[2].mxu1 }
 0x1cd   :  { %172 = vmax.xlane.f32.xlu0 %v167_v16  ;;  %v227_v19 = vpop.f32.mrb[3].mxu1 }
 0x25a   :  { %v173_v20 = vpop.xlane.xlu0 %172 }
 0x25b   :  { %v174_v21 = vsub.f32 %v167_v16, %v173_v20 }
 0x25d   :  { %v175_v22 = vmul.f32 1.442695, %v174_v21 }
 0x25f   :  { %238 = vpow2.f32 %v175_v22 }
 0x269   :  { %v239_v23 = vpop.eup %238 }
 0x26a   :  { %177 = vadd.xlane.f32.xlu0 %v239_v23 }
 0x2f7   :  { %v178_v24 = vpop.xlane.xlu0 %177 }
 0x2f8   :  { %240 = vlog2.f32 %v178_v24 }
 0x302   :  { %v241_v25 = vpop.eup %240 }
 0x303   :  { %v180_v26 = vmul.f32 0.6931472, %v241_v25 }
 0x305   :  { %v181_v27 = vsub.f32 %v174_v21, %v180_v26 }
 0x307   :  { %182 = vst [vmem:[#allocation5] sm:$0xff] %v181_v27 }
 0x308   :  { %275 = shalt.err (!%p272_p12)
}
 0x309   :  { %s276_s17 = scalar_lea.hbm %s370_s5, 128 }
 0x30a   :  { %p277_p13 = scmp.ne.s32.totalorder %s370_s5, %s276_s17  ;;  %p280_p0 = scmp.lt.u32.totalorder %s276_s17, %s370_s5 }
 0x30c   :  { %p282_p1 = pnand %p280_p0, %p277_p13 }
 0x30e   :  { %285 = shalt.err (!%p282_p1)
}
 0x30f   :  { %192 = dma.vmem_to_hbm [thread:$0]  %s190_s3, 128, %s370_s5, [#allocation4]  }
 0x310   :  { %288 = dma.done.wait [#allocation4], 128  }
 0x311   :  { %289 = vsyncadd [#allocation4], 4294967168 }
 0x312   :  { %196 = vsyncpa [#allocation3], 1 }
 0x313   :  { %197 = vsyncpa [#allocation4], 1 }

</bundles_post_ra>
